<compile_context>
chip_gen: v6e
topology: v6e:2x2x1
jax: 0.10.0
libtpu: 0.0.40
codegen_flags: <defaults>
</compile_context>

<pallas_src>
import functools
import math

import jax
import jax.numpy as jnp
from jax.experimental import pallas as pl
from jax.experimental.pallas import tpu as pltpu


# ----------------------------- Pallas kernel -------------------------------

def _rmsnorm_kernel(eps, x_ref, w_ref, o_ref):
    # x_ref: (TM, D) row tile; w_ref: (1, D) resident weight; o_ref: (TM, D).
    x = x_ref[...].astype(jnp.float32)
    ms = jnp.mean(x * x, axis=-1, keepdims=True)
    inv = jax.lax.rsqrt(ms + eps)
    # Matches torch: self._norm(x.float()).type_as(x) * self.weight
    normed = (x * inv).astype(x_ref.dtype)
    o_ref[...] = (normed * w_ref[...]).astype(o_ref.dtype)


# --------------------------- tile-size selection ----------------------------

def _vmem_capacity_bytes():
    try:
        return int(pltpu.get_tpu_info().vmem_capacity_bytes)
    except Exception:
        return 64 * 1024 * 1024          # conservative (v7x-sized) fallback


def _row_alignment(itemsize):
    # Packed-sublane multiple: fp32 -> 8 rows, bf16 -> 16, int8/fp8 -> 32.
    return max(8, 8 * (4 // max(1, itemsize)))


def _choose_row_tile(M, D, x_itemsize, out_itemsize):
    """Returns (TM, vmem_limit_bytes)."""
    vmem_cap = _vmem_capacity_bytes()
    if vmem_cap >= 100 * 1024 * 1024:     # v5e / v6e: 128 MiB physical VMEM
        budget_bytes = 16 * 1024 * 1024
        vmem_limit = 64 * 1024 * 1024
    else:                                  # v7x: 64 MiB per TensorCore
        budget_bytes = 6 * 1024 * 1024
        vmem_limit = 40 * 1024 * 1024

    align = _row_alignment(x_itemsize)

    # Per grid step VMEM: 2x input tile + 2x output tile (double-buffered)
    # plus ~3 block-sized fp32 temporaries materialized by the elementwise math.
    per_row = D * (2 * x_itemsize + 2 * out_itemsize + 3 * 4)
    tm = budget_bytes // max(per_row, 1)

    # Megacore / pipelining: keep >= 4 grid steps (>= 2 per TC on v7x) whenever
    # M is large enough to split.
    if M >= 4 * align:
        tm = min(tm, M // 4)

    tm = max(align, (tm // align) * align)

    if M <= tm:
        return M, vmem_limit               # single full-extent block is legal
    return tm, vmem_limit


# ---------------------------------- wrapper ---------------------------------

def rmsnorm(x, w, eps=1e-6, block_rows=None):
    """RMSNorm over the last dim of x (any leading shape), weight w: (D,)."""
    orig_shape = x.shape
    D = orig_shape[-1]
    M = math.prod(orig_shape[:-1]) if len(orig_shape) > 1 else 1
    x2 = x.reshape(M, D)
    out_dtype = jnp.promote_types(x.dtype, w.dtype)   # torch promotion semantics

    tm, vmem_limit = _choose_row_tile(
        M, D, jnp.dtype(x.dtype).itemsize, jnp.dtype(out_dtype).itemsize)
    if block_rows is not None:
        tm = min(block_rows, M)

    grid = (pl.cdiv(M, tm),)

    out = pl.pallas_call(
        functools.partial(_rmsnorm_kernel, eps),
        out_shape=jax.ShapeDtypeStruct((M, D), out_dtype),
        grid=grid,
        in_specs=[
            pl.BlockSpec((tm, D), lambda i: (i, 0)),   # row tile of activations
            pl.BlockSpec((1, D), lambda i: (0, 0)),    # weight: resident block
        ],
        out_specs=pl.BlockSpec((tm, D), lambda i: (i, 0)),
        compiler_params=pltpu.CompilerParams(
            dimension_semantics=("parallel",),          # megacore on v7x
            vmem_limit_bytes=vmem_limit,
        ),
    )(x2, w.reshape(1, D))

    return out.reshape(orig_shape) if len(orig_shape) > 1 else out.reshape(D)


# --------------------- pure-JAX reference (sanity check) -------------------

def rmsnorm_reference(x, w, eps=1e-6):
    xf = x.astype(jnp.float32)
    normed = (xf * jax.lax.rsqrt(
        jnp.mean(xf * xf, axis=-1, keepdims=True) + eps)).astype(x.dtype)
    return normed * w


# --------------------------------- main -------------------------------------

if __name__ == "__main__":
    key = jax.random.PRNGKey(0)
    k1, k2, k3, k4 = jax.random.split(key, 4)

    # Case 1: small fp32 case (torch default dtype): batch=2, seq=8, dim=512.
    B, S, D = 2, 8, 512
    x32 = jax.random.normal(k1, (B, S, D), jnp.float32)
    w32 = 1.0 + 0.05 * jax.random.normal(k2, (D,), jnp.float32)
    out32 = jax.block_until_ready(rmsnorm(x32, w32, eps=1e-6))
    ref32 = rmsnorm_reference(x32, w32, eps=1e-6)
    assert out32.shape == (B, S, D) and out32.dtype == jnp.float32
    assert bool(jnp.isfinite(out32).all()), "non-finite output (fp32 case)"
    diff32 = float(jnp.max(jnp.abs(out32 - ref32)))
    assert diff32 < 1e-5, f"fp32 mismatch vs reference: {diff32}"

    # Case 2: bf16 activations + weight, M not a multiple of the chosen row tile
    # (exercises the byte-budgeted chooser, the >=4-step grid, the ragged last
    # block, and the 16-row packed-sublane alignment for bf16).
    B2, S2 = 4, 300                      # M = 1200 rows
    xb = jax.random.normal(k3, (B2, S2, D), jnp.float32).astype(jnp.bfloat16)
    wb = (1.0 + 0.05 * jax.random.normal(k4, (D,), jnp.float32)).astype(jnp.bfloat16)
    outb = jax.block_until_ready(rmsnorm(xb, wb, eps=1e-6))
    refb = rmsnorm_reference(xb, wb, eps=1e-6)
    assert outb.shape == (B2, S2, D) and outb.dtype == jnp.bfloat16
    assert bool(jnp.isfinite(outb.astype(jnp.float32)).all()), "non-finite output (bf16 case)"
    diffb = float(jnp.max(jnp.abs(outb.astype(jnp.float32) - refb.astype(jnp.float32))))
    assert diffb < 3e-2, f"bf16 mismatch vs reference: {diffb}"

    print("KERNEL_OK")
</pallas_src>

<mosaic_0001>
module attributes {stable_mosaic.version = 11 : i64} {
  func.func @_rmsnorm_kernel(%arg0: i32, %arg1: memref<16x512xf32, #tpu.memory_space<vmem>>, %arg2: memref<1x512xf32, #tpu.memory_space<vmem>>, %arg3: memref<16x512xf32, #tpu.memory_space<vmem>>) attributes {dimension_semantics = [#tpu.dimension_semantics<parallel>], iteration_bounds = array<i64: 1>, scalar_prefetch = 0 : i64, scratch_operands = 0 : i64, tpu.core_type = #tpu.core_type<tc>, window_params = [{transform_indices = @transform_0, window_bounds = array<i64: 16, 512>}, {pipeline_mode = #tpu.pipeline_mode<synchronous>, transform_indices = @transform_1, window_bounds = array<i64: 1, 512>}, {transform_indices = @transform_2, window_bounds = array<i64: 16, 512>}]} {
    %c0 = arith.constant 0 : index
    %c0_0 = arith.constant 0 : index
    %0 = vector.load %arg1[%c0, %c0_0] : memref<16x512xf32, #tpu.memory_space<vmem>>, vector<16x512xf32>
    %1 = arith.mulf %0, %0 : vector<16x512xf32>
    %cst = arith.constant dense<0.000000e+00> : vector<16xf32>
    %2 = vector.multi_reduction <add>, %1, %cst [1] : vector<16x512xf32> to vector<16xf32>
    %3 = vector.shape_cast %2 : vector<16xf32> to vector<16x1xf32>
    %cst_1 = arith.constant 5.120000e+02 : f32
    %4 = vector.broadcast %cst_1 : f32 to vector<16x1xf32>
    %5 = arith.divf %3, %4 : vector<16x1xf32>
    %cst_2 = arith.constant 9.99999997E-7 : f32
    %6 = vector.broadcast %cst_2 : f32 to vector<16x1xf32>
    %7 = arith.addf %5, %6 : vector<16x1xf32>
    %8 = math.rsqrt %7 : vector<16x1xf32>
    %9 = vector.broadcast %8 : vector<16x1xf32> to vector<16x512xf32>
    %10 = arith.mulf %0, %9 : vector<16x512xf32>
    %c0_3 = arith.constant 0 : index
    %c0_4 = arith.constant 0 : index
    %11 = vector.load %arg2[%c0_3, %c0_4] : memref<1x512xf32, #tpu.memory_space<vmem>>, vector<1x512xf32>
    %12 = vector.broadcast %11 : vector<1x512xf32> to vector<16x512xf32>
    %13 = arith.mulf %10, %12 : vector<16x512xf32>
    %c0_5 = arith.constant 0 : index
    %c0_6 = arith.constant 0 : index
    %14 = vector.load %arg3[%c0_5, %c0_6] : memref<16x512xf32, #tpu.memory_space<vmem>>, vector<16x512xf32>
    tpu.vector_store %arg3[%c0_5, %c0_6], %13 {strides = array<i32>} : memref<16x512xf32, #tpu.memory_space<vmem>>, vector<16x512xf32>,
    return
  }
  func.func @transform_0(%arg0: i32) -> (i32, i32) {
    %c0_i32 = arith.constant 0 : i32
    %c0_i32_0 = arith.constant 0 : i32
    return %arg0, %c0_i32 : i32, i32
  }
  func.func @transform_1(%arg0: i32) -> (i32, i32) {
    %c0_i32 = arith.constant 0 : i32
    %c0_i32_0 = arith.constant 0 : i32
    %c0_i32_1 = arith.constant 0 : i32
    return %c0_i32, %c0_i32_0 : i32, i32
  }
  func.func @transform_2(%arg0: i32) -> (i32, i32) {
    %c0_i32 = arith.constant 0 : i32
    %c0_i32_0 = arith.constant 0 : i32
    return %arg0, %c0_i32 : i32, i32
  }
}

</mosaic_0001>

<bundles_post_ra>
// kernel: tpu_custom_call.1
= control target key start
LH: loop header
LB: loop body
LE: loop exit
PB: predicated region body
PF: predicated region fallthrough
CT: control target
= control target key end

     0   :  { %7 = vsyncpa [#allocation3], 0  ;;  %s245_s0 = inlined_call_operand.hbm [shape: f32[16,512], index: 0, kind: input, shape index: {}]   ;;  %s246_s1 = inlined_call_operand.hbm [shape: f32[1,512], index: 1, kind: input, shape index: {}]   ;;  %s247_s2 = inlined_call_operand.hbm [shape: f32[16,512], index: 2, kind: output, shape index: {}]  }
   0x1   :  { %8 = vsyncpa [#allocation6], 0 }
   0x2   :  { %9 = vsyncpa [#allocation4], 0  ;;  %s210_s9 = smov [#allocation2]  }
   0x3   :  { %s15_s10 = sshll.u32 %s210_s9, 4  ;;  %s16_s10 = int_to_ptr.vmem [resolvable:$true] %s15_s10 }
   0x4   :  { %s152_s11 = scalar_lea.vmem %s16_s10, 1024  ;;  %p157_p1 = scmp.lt.s32.totalorder %s16_s10, %s16_s10 }
   0x5   :  { %p153_p0 = scmp.ne.s32.totalorder %s16_s10, %s152_s11  ;;  %p158_p2 = scmp.lt.s32.totalorder %s152_s11, %s152_s11 }
   0x7   :  { %p159_p3 = por %p158_p2, %p157_p1 }
   0x9   :  { %p160_p4 = pnand %p159_p3, %p153_p0 }
   0xb   :  { %163 = shalt.err (!%p160_p4)
}
   0xc   :  { %s211_s12 = smov 512   ;;  %s212_s13 = smov 32  }
   0xd   :  { %21 = dma.hbm_to_vmem [thread:$0]  %s245_s0, 1024, %s16_s10, [#allocation3], %s211_s12, %s211_s12, %s212_s13  }
   0xe   :  { %s213_s16 = smov [#allocation5]  }
   0xf   :  { %s28_s17 = sshll.u32 %s213_s16, 4  ;;  %s29_s17 = int_to_ptr.vmem [resolvable:$true] %s28_s17 }
  0x10   :  { %s172_s18 = scalar_lea.vmem %s29_s17, 64  ;;  %p177_p6 = scmp.lt.s32.totalorder %s29_s17, %s29_s17 }
  0x11   :  { %p173_p5 = scmp.ne.s32.totalorder %s29_s17, %s172_s18  ;;  %p178_p7 = scmp.lt.s32.totalorder %s172_s18, %s172_s18 }
  0x13   :  { %p179_p8 = por %p178_p7, %p177_p6 }
  0x15   :  { %p180_p9 = pnand %p179_p8, %p173_p5 }
  0x17   :  { %183 = shalt.err (!%p180_p9)
}
  0x18   :  { %31 = dma.hbm_to_vmem [thread:$0]  %s246_s1, 64, %s29_s17, [#allocation6]  }
  0x19   :  { %204 = dma.done.wait [#allocation3], 1024  }
  0x1a   :  { %205 = vsyncadd [#allocation3], 4294966272 }
  0x1b   :  { %206 = dma.done.wait [#allocation6], 64  }
  0x1c   :  { %207 = vsyncadd [#allocation6], 4294967232  ;;  %v38_v0 = vld [vmem:[#allocation2] sm:$0xff]  ;;  %v39_v1 = vld [vmem:[#allocation2 + $0x8] sm:$0xff]  ;;  %v81_v27 = vlaneseq  ;;  %s214_s0 = smov [#allocation7]  }
  0x1d   :  { %v40_v2 = vld [vmem:[#allocation2 + $0x10] sm:$0xff]  ;;  %v41_v3 = vld [vmem:[#allocation2 + $0x18] sm:$0xff]  ;;  %v46_v4 = vmul.f32 %v38_v0, %v38_v0  ;;  %v47_v5 = vmul.f32 %v39_v1, %v39_v1  ;;  %v42_v7 = vld [vmem:[#allocation2 + $0x20] sm:$0xff]  ;;  %s122_s1 = sshll.u32 %s214_s0, 4  ;;  %s123_s1 = int_to_ptr.vmem [resolvable:$true] %s122_s1 }
  0x1e   :  { %v48_v6 = vmul.f32 %v40_v2, %v40_v2  ;;  %v43_v8 = vld [vmem:[#allocation2 + $0x28] sm:$0xff]  ;;  %v44_v9 = vld [vmem:[#allocation2 + $0x30] sm:$0xff]  ;;  %v45_v10 = vld [vmem:[#allocation2 + $0x38] sm:$0xff]  ;;  %v50_v11 = vmul.f32 %v42_v7, %v42_v7  ;;  %v49_v13 = vmul.f32 %v41_v3, %v41_v3  ;;  %v82_v29 = vshrl.u32 %v81_v27, 7  ;;  %s184_s21 = scalar_lea.vmem %s123_s1, 1024  ;;  %p189_p11 = scmp.lt.s32.totalorder %s123_s1, %s123_s1 }
  0x1f   :  { %v51_v12 = vmul.f32 %v43_v8, %v43_v8  ;;  %v54_v14 = vadd.f32 %v47_v5, %v46_v4  ;;  %v52_v15 = vmul.f32 %v44_v9, %v44_v9  ;;  %v53_v18 = vmul.f32 %v45_v10, %v45_v10  ;;  %v79_v34 = vld [vmem:[#allocation5] sm:$0xf]  ;;  %p185_p10 = scmp.ne.s32.totalorder %s123_s1, %s184_s21  ;;  %p190_p12 = scmp.lt.s32.totalorder %s184_s21, %s184_s21 }
  0x20   :  { %v83_v30 = vsub.s32 0, %v82_v29  ;;  %v87_v31 = vsub.s32 1, %v82_v29  ;;  %v91_v32 = vsub.s32 2, %v82_v29  ;;  %v95_v33 = vsub.s32 3, %v82_v29 }
  0x21   :  { %v59_v16 = vadd.f32 %v51_v12, %v50_v11  ;;  %v55_v17 = vadd.f32 %v54_v14, %v48_v6  ;;  %p191_p13 = por %p190_p12, %p189_p11 }
  0x22   :  { %v84_v35 = vrot.slane %v79_v34, %v83_v30  ;;  %v88_v36 = vrot.slane %v79_v34, %v87_v31  ;;  %v92_v37 = vrot.slane %v79_v34, %v91_v32  ;;  %v96_v38 = vrot.slane %v79_v34, %v95_v33 }
  0x23   :  { %v60_v19 = vadd.f32 %v59_v16, %v52_v15  ;;  %v56_v20 = vadd.f32 %v55_v17, %v49_v13  ;;  %p192_p0 = pnand %p191_p13, %p185_p10 }
  0x25   :  { %57 = vadd.xlane.f32.xlu0 %v56_v20  ;;  %v61_v21 = vadd.f32 %v60_v19, %v53_v18 }
  0x29   :  { %62 = vadd.xlane.f32.xlu0 %v61_v21 }
  0xae   :  { %v58_v22 = vpop.xlane.xlu0 %57 }
  0xaf   :  { %v65_v23 = vmul.f32 0.001953125, %v58_v22 }
  0xb1   :  { %v67_v24 = vadd.f32 1e-06, %v65_v23 }
  0xb2   :  { %v63_v25 = vpop.xlane.xlu0 %62 }
  0xb3   :  { %140 = vrsqrt.f32 %v67_v24  ;;  %v66_v26 = vmul.f32 0.001953125, %v63_v25 }
  0xb5   :  { %v68_v28 = vadd.f32 1e-06, %v66_v26 }
  0xb7   :  { %142 = vrsqrt.f32 %v68_v28 }
  0xc0   :  { %v141_v39 = vpop.eup %140 }
  0xc1   :  { %v71_v40 = vmul.f32 %v141_v39, %v38_v0  ;;  %v72_v41 = vmul.f32 %v141_v39, %v39_v1  ;;  %v73_v42 = vmul.f32 %v141_v39, %v40_v2  ;;  %v74_v43 = vmul.f32 %v141_v39, %v41_v3 }
  0xc3   :  { %v101_v44 = vmul.f32 %v84_v35, %v71_v40  ;;  %v102_v45 = vmul.f32 %v88_v36, %v72_v41  ;;  %v103_v46 = vmul.f32 %v92_v37, %v73_v42  ;;  %v104_v47 = vmul.f32 %v96_v38, %v74_v43 }
  0xc4   :  { %v143_v48 = vpop.eup %142 }
  0xc5   :  { %v75_v49 = vmul.f32 %v143_v48, %v42_v7  ;;  %v76_v50 = vmul.f32 %v143_v48, %v43_v8  ;;  %v77_v51 = vmul.f32 %v143_v48, %v44_v9  ;;  %v78_v52 = vmul.f32 %v143_v48, %v45_v10  ;;  %109 = vst [vmem:[#allocation7] sm:$0xff] %v101_v44 }
  0xc6   :  { %110 = vst [vmem:[#allocation7 + $0x8] sm:$0xff] %v102_v45  ;;  %111 = vst [vmem:[#allocation7 + $0x10] sm:$0xff] %v103_v46 }
  0xc7   :  { %112 = vst [vmem:[#allocation7 + $0x18] sm:$0xff] %v104_v47  ;;  %v105_v53 = vmul.f32 %v84_v35, %v75_v49  ;;  %v106_v54 = vmul.f32 %v88_v36, %v76_v50  ;;  %v107_v55 = vmul.f32 %v92_v37, %v77_v51  ;;  %v108_v56 = vmul.f32 %v96_v38, %v78_v52 }
  0xc9   :  { %113 = vst [vmem:[#allocation7 + $0x20] sm:$0xff] %v105_v53  ;;  %114 = vst [vmem:[#allocation7 + $0x28] sm:$0xff] %v106_v54 }
  0xca   :  { %115 = vst [vmem:[#allocation7 + $0x30] sm:$0xff] %v107_v55  ;;  %116 = vst [vmem:[#allocation7 + $0x38] sm:$0xff] %v108_v56 }
  0xcb   :  { %195 = shalt.err (!%p192_p0)
}
  0xcc   :  { %128 = dma.vmem_to_hbm [thread:$0]  %s123_s1, 1024, %s247_s2, [#allocation4], %s211_s12, %s211_s12, %s212_s13  }
  0xcd   :  { %208 = dma.done.wait [#allocation4], 1024  }
  0xce   :  { %209 = vsyncadd [#allocation4], 4294966272 }
  0xcf   :  { %132 = vsyncpa [#allocation3], 1 }
  0xd0   :  { %133 = vsyncpa [#allocation6], 1 }
  0xd1   :  { %134 = vsyncpa [#allocation4], 1 }

</bundles_post_ra>
